<compile_context>
chip_gen: v6e
topology: v6e:2x2x1
jax: 0.10.0
libtpu: 0.0.40
codegen_flags: <defaults>
</compile_context>

<pallas_src>
import functools

import jax
import jax.numpy as jnp
from jax.experimental import pallas as pl
from jax.experimental.pallas import tpu as pltpu


def _tile_size(n, preferred=128):
    """Preferred MXU-friendly tile if it divides n, else the full extent."""
    return preferred if (n >= preferred and n % preferred == 0) else n


# ---------------- kernel 1: Linear + concat + GraphConv-1 + ReLU -----------

def _layer1_kernel(doc_ref, word_ref, adj_ref, lin_w_ref, lin_b_ref,
                   w1_ref, b1_ref, h1_ref, x_vmem, agg_acc,
                   *, n_doc, n_word, tile_m, tile_k):
    i = pl.program_id(0)
    k = pl.program_id(1)

    # Build x = [doc @ W_lin + b_lin ; word] once in VMEM.  Scratch persists
    # across grid iterations, so this runs only on the very first step.
    @pl.when(jnp.logical_and(i == 0, k == 0))
    def _():
        doc_proj = (jnp.dot(doc_ref[...], lin_w_ref[...],
                            preferred_element_type=jnp.float32)
                    + lin_b_ref[...])
        x_vmem[pl.ds(0, n_doc), :] = doc_proj
        x_vmem[pl.ds(n_doc, n_word), :] = word_ref[...]

    @pl.when(k == 0)
    def _():
        agg_acc[...] = jnp.zeros_like(agg_acc)

    # Neighbor aggregation: accumulate A[i-tile, k-tile] @ x[k-tile].
    # A is 0/1 stored in bf16 (exact); accumulate in f32.
    k_start = pl.multiple_of(k * tile_k, tile_k)
    x_k = x_vmem[pl.ds(k_start, tile_k), :]
    agg_acc[...] += jnp.dot(adj_ref[...].astype(jnp.float32), x_k,
                            preferred_element_type=jnp.float32)

    # Finalize: one stacked K=2D weight matmul + bias + ReLU (only at last k).
    @pl.when(k == pl.num_programs(1) - 1)
    def _():
        i_start = pl.multiple_of(i * tile_m, tile_m)
        x_i = x_vmem[pl.ds(i_start, tile_m), :]
        stacked = jnp.concatenate([x_i, agg_acc[...]], axis=-1)   # (TM, 2D)
        h = (jnp.dot(stacked, w1_ref[...], preferred_element_type=jnp.float32)
             + b1_ref[...])
        h1_ref[...] = jnp.maximum(h, 0.0)


# ---------------- kernel 2: GraphConv-2 -------------------------------------

def _layer2_kernel(adj_ref, h_self_ref, h_agg_ref, w2_ref, b2_ref,
                   out_ref, agg_acc):
    k = pl.program_id(1)

    @pl.when(k == 0)
    def _():
        agg_acc[...] = jnp.zeros_like(agg_acc)

    agg_acc[...] += jnp.dot(adj_ref[...].astype(jnp.float32), h_agg_ref[...],
                            preferred_element_type=jnp.float32)

    @pl.when(k == pl.num_programs(1) - 1)
    def _():
        stacked = jnp.concatenate([h_self_ref[...], agg_acc[...]], axis=-1)
        out_ref[...] = (jnp.dot(stacked, w2_ref[...],
                                preferred_element_type=jnp.float32)
                        + b2_ref[...])


# ---------------- wrapper ----------------------------------------------------

def glove_graph_encoder(doc_feats, word_feats, adj, params, mode="eval"):
    del mode  # eval semantics (dropout off)
    n_doc, doc_dim = doc_feats.shape
    n_word, word_dim = word_feats.shape
    n = n_doc + n_word
    hid1 = params["w_self1"].shape[1]
    hid2 = params["w_self2"].shape[1]

    tm = _tile_size(n)
    tk = _tile_size(n)
    grid = (n // tm, n // tk)

    # 0/1 adjacency is exact in bf16 -> halve its HBM traffic (the dominant
    # bytes in the aggregation matmul).  On v5e an int8 adjacency would also
    # be exact, but bf16 is safe on all generations (v7x MXU has no int path).
    adj_bf16 = adj.astype(jnp.bfloat16)

    # Stack self/neighbor weights once on the host -> one K=2D matmul / layer.
    w1 = jnp.concatenate([params["w_self1"], params["w_neigh1"]], axis=0)
    w2 = jnp.concatenate([params["w_self2"], params["w_neigh2"]], axis=0)

    def full(shape):
        return pl.BlockSpec(shape, lambda i, k: (0, 0))

    # ---- call 1: Linear(doc) + concat + GraphConv layer 1 + ReLU ----------
    h1 = pl.pallas_call(
        functools.partial(_layer1_kernel, n_doc=n_doc, n_word=n_word,
                          tile_m=tm, tile_k=tk),
        out_shape=jax.ShapeDtypeStruct((n, hid1), jnp.float32),
        grid_spec=pltpu.PrefetchScalarGridSpec(
            num_scalar_prefetch=0,
            grid=grid,
            in_specs=[
                full((n_doc, doc_dim)),                        # doc_feats
                full((n_word, word_dim)),                      # word_feats
                pl.BlockSpec((tm, tk), lambda i, k: (i, k)),   # adjacency
                full((doc_dim, word_dim)),                     # lin_w
                full((1, word_dim)),                           # lin_b
                full((2 * word_dim, hid1)),                    # stacked W1
                full((1, hid1)),                               # b1
            ],
            out_specs=pl.BlockSpec((tm, hid1), lambda i, k: (i, 0)),
            scratch_shapes=[
                pltpu.VMEM((n, word_dim), jnp.float32),   # x (node features)
                pltpu.VMEM((tm, word_dim), jnp.float32),  # aggregation acc
            ]),
        compiler_params=pltpu.CompilerParams(
            # Row axis stays "arbitrary": x_vmem is built once at the first
            # grid step and reused by all row tiles (a per-core scratch under
            # megacore 'parallel' would be uninitialized on the other core).
            dimension_semantics=("arbitrary", "arbitrary")),
    )(doc_feats, word_feats, adj_bf16, params["lin_w"], params["lin_b"],
      w1, params["b1"])

    # ---- call 2: GraphConv layer 2 (needs all of h1 for A @ h1) -----------
    # TODO(synk): h1 could be kept bf16 for the inter-layer HBM round trip at
    # a small accuracy cost; kept f32 here to preserve 1e-4 parity.
    out = pl.pallas_call(
        _layer2_kernel,
        out_shape=jax.ShapeDtypeStruct((n, hid2), jnp.float32),
        grid_spec=pltpu.PrefetchScalarGridSpec(
            num_scalar_prefetch=0,
            grid=grid,
            in_specs=[
                pl.BlockSpec((tm, tk), lambda i, k: (i, k)),    # adjacency
                pl.BlockSpec((tm, hid1), lambda i, k: (i, 0)),  # h1 (self)
                pl.BlockSpec((tk, hid1), lambda i, k: (k, 0)),  # h1 (agg)
                full((2 * hid1, hid2)),                         # stacked W2
                full((1, hid2)),                                # b2
            ],
            out_specs=pl.BlockSpec((tm, hid2), lambda i, k: (i, 0)),
            scratch_shapes=[pltpu.VMEM((tm, hid1), jnp.float32)]),
        compiler_params=pltpu.CompilerParams(
            dimension_semantics=("parallel", "arbitrary")),
    )(adj_bf16, h1, h1, w2, params["b2"])
    return out


# ---------------- reference (pure JAX) ---------------------------------------

def _reference(doc_feats, word_feats, adj, p):
    doc_proj = doc_feats @ p["lin_w"] + p["lin_b"]
    x = jnp.concatenate([doc_proj, word_feats], axis=0)
    h1 = jnp.maximum(x @ p["w_self1"] + (adj @ x) @ p["w_neigh1"] + p["b1"], 0.0)
    return h1 @ p["w_self2"] + (adj @ h1) @ p["w_neigh2"] + p["b2"]


# ---------------- main --------------------------------------------------------

if __name__ == "__main__":
    DOC_DIM, WORD_DIM, HIDDEN = 256, 128, 128
    N_DOC, N_WORD = 8, 8
    N = N_DOC + N_WORD

    key = jax.random.PRNGKey(0)
    ks = jax.random.split(key, 10)

    def init(k, shape, fan_in):
        return (jax.random.uniform(k, shape, jnp.float32, -1.0, 1.0)
                / jnp.sqrt(jnp.float32(fan_in)))

    params = {
        "lin_w":    init(ks[0], (DOC_DIM, WORD_DIM), DOC_DIM),
        "lin_b":    init(ks[1], (1, WORD_DIM), DOC_DIM),
        "w_self1":  init(ks[2], (WORD_DIM, HIDDEN), WORD_DIM),
        "w_neigh1": init(ks[3], (WORD_DIM, HIDDEN), WORD_DIM),
        "b1":       init(ks[4], (1, HIDDEN), WORD_DIM),
        "w_self2":  init(ks[5], (HIDDEN, HIDDEN), HIDDEN),
        "w_neigh2": init(ks[6], (HIDDEN, HIDDEN), HIDDEN),
        "b2":       init(ks[7], (1, HIDDEN), HIDDEN),
    }

    doc_feats = jax.random.normal(ks[8], (N_DOC, DOC_DIM), jnp.float32)
    word_feats = jax.random.normal(ks[9], (N_WORD, WORD_DIM), jnp.float32)

    # Deterministic graph: ring over all nodes + doc_i <-> word_i edges.
    adj = jnp.zeros((N, N), jnp.float32)
    rows, cols = [], []
    for i in range(N):
        rows += [i, (i + 1) % N]
        cols += [(i + 1) % N, i]
    for i in range(N_DOC):
        rows += [i, N_DOC + i]
        cols += [N_DOC + i, i]
    adj = adj.at[jnp.array(rows), jnp.array(cols)].set(1.0)

    out = glove_graph_encoder(doc_feats, word_feats, adj, params, mode="eval")
    out = jax.block_until_ready(out)

    ref = _reference(doc_feats, word_feats, adj, params)
    assert out.shape == (N, HIDDEN)
    assert jnp.allclose(out, ref, atol=1e-4, rtol=1e-4)

    print("KERNEL_OK")
</pallas_src>

<mosaic_0001>
module attributes {stable_mosaic.version = 11 : i64} {
  func.func @_layer1_kernel(%arg0: i32, %arg1: i32, %arg2: memref<8x256xf32, #tpu.memory_space<vmem>>, %arg3: memref<8x128xf32, #tpu.memory_space<vmem>>, %arg4: memref<16x16xbf16, #tpu.memory_space<vmem>>, %arg5: memref<256x128xf32, #tpu.memory_space<vmem>>, %arg6: memref<1x128xf32, #tpu.memory_space<vmem>>, %arg7: memref<256x128xf32, #tpu.memory_space<vmem>>, %arg8: memref<1x128xf32, #tpu.memory_space<vmem>>, %arg9: memref<16x128xf32, #tpu.memory_space<vmem>>, %arg10: memref<16x128xf32, #tpu.memory_space<vmem>>, %arg11: memref<16x128xf32, #tpu.memory_space<vmem>>) attributes {dimension_semantics = [#tpu.dimension_semantics<arbitrary>, #tpu.dimension_semantics<arbitrary>], iteration_bounds = array<i64: 1, 1>, scalar_prefetch = 0 : i64, scratch_operands = 2 : i64, tpu.core_type = #tpu.core_type<tc>, window_params = [{pipeline_mode = #tpu.pipeline_mode<synchronous>, transform_indices = @transform_0, window_bounds = array<i64: 8, 256>}, {pipeline_mode = #tpu.pipeline_mode<synchronous>, transform_indices = @transform_1, window_bounds = array<i64: 8, 128>}, {transform_indices = @transform_2, window_bounds = array<i64: 16, 16>}, {pipeline_mode = #tpu.pipeline_mode<synchronous>, transform_indices = @transform_3, window_bounds = array<i64: 256, 128>}, {pipeline_mode = #tpu.pipeline_mode<synchronous>, transform_indices = @transform_4, window_bounds = array<i64: 1, 128>}, {pipeline_mode = #tpu.pipeline_mode<synchronous>, transform_indices = @transform_5, window_bounds = array<i64: 256, 128>}, {pipeline_mode = #tpu.pipeline_mode<synchronous>, transform_indices = @transform_6, window_bounds = array<i64: 1, 128>}, {transform_indices = @transform_7, window_bounds = array<i64: 16, 128>}]} {
    %c0_i32 = arith.constant 0 : i32
    %0 = arith.cmpi eq, %arg0, %c0_i32 : i32
    %c0_i32_0 = arith.constant 0 : i32
    %1 = arith.cmpi eq, %arg1, %c0_i32_0 : i32
    %2 = arith.andi %0, %1 : i1
    %3 = arith.extui %2 : i1 to i32
    %c0_i32_1 = arith.constant 0 : i32
    %4 = arith.cmpi ne, %3, %c0_i32_1 : i32
    scf.if %4 {
      %c0_12 = arith.constant 0 : index
      %c0_13 = arith.constant 0 : index
      %21 = vector.load %arg2[%c0_12, %c0_13] : memref<8x256xf32, #tpu.memory_space<vmem>>, vector<8x256xf32>
      %c0_14 = arith.constant 0 : index
      %c0_15 = arith.constant 0 : index
      %22 = vector.load %arg5[%c0_14, %c0_15] : memref<256x128xf32, #tpu.memory_space<vmem>>, vector<256x128xf32>
      %cst_16 = arith.constant dense<0.000000e+00> : vector<8x128xf32>
      %23 = tpu.matmul %21, %22, %cst_16 {dimension_numbers = #tpu.dot_dimension_numbers<[1], [0], [0], [1], [0, 0, 1, 1], [], []>} : vector<8x256xf32>, vector<256x128xf32>, vector<8x128xf32> -> vector<8x128xf32>
      %c0_17 = arith.constant 0 : index
      %c0_18 = arith.constant 0 : index
      %24 = vector.load %arg6[%c0_17, %c0_18] : memref<1x128xf32, #tpu.memory_space<vmem>>, vector<1x128xf32>
      %25 = vector.broadcast %24 : vector<1x128xf32> to vector<8x128xf32>
      %26 = arith.addf %23, %25 : vector<8x128xf32>
      %c0_19 = arith.constant 0 : index
      %c0_20 = arith.constant 0 : index
      %27 = vector.load %arg10[%c0_19, %c0_20] : memref<16x128xf32, #tpu.memory_space<vmem>>, vector<8x128xf32>
      tpu.vector_store %arg10[%c0_19, %c0_20], %26 {strides = array<i32>} : memref<16x128xf32, #tpu.memory_space<vmem>>, vector<8x128xf32>,
      %c0_21 = arith.constant 0 : index
      %c0_22 = arith.constant 0 : index
      %28 = vector.load %arg3[%c0_21, %c0_22] : memref<8x128xf32, #tpu.memory_space<vmem>>, vector<8x128xf32>
      %c8 = arith.constant 8 : index
      %c0_23 = arith.constant 0 : index
      %29 = vector.load %arg10[%c8, %c0_23] : memref<16x128xf32, #tpu.memory_space<vmem>>, vector<8x128xf32>
      tpu.vector_store %arg10[%c8, %c0_23], %28 {strides = array<i32>} : memref<16x128xf32, #tpu.memory_space<vmem>>, vector<8x128xf32>,
    } else {
    }
    %c0_i32_2 = arith.constant 0 : i32
    %5 = arith.cmpi eq, %arg1, %c0_i32_2 : i32
    %6 = arith.extui %5 : i1 to i32
    %c0_i32_3 = arith.constant 0 : i32
    %7 = arith.cmpi ne, %6, %c0_i32_3 : i32
    scf.if %7 {
      %cst_12 = arith.constant 0.000000e+00 : f32
      %21 = vector.broadcast %cst_12 : f32 to vector<16x128xf32>
      %c0_13 = arith.constant 0 : index
      %c0_14 = arith.constant 0 : index
      %22 = vector.load %arg11[%c0_13, %c0_14] : memref<16x128xf32, #tpu.memory_space<vmem>>, vector<16x128xf32>
      tpu.vector_store %arg11[%c0_13, %c0_14], %21 {strides = array<i32>} : memref<16x128xf32, #tpu.memory_space<vmem>>, vector<16x128xf32>,
    } else {
    }
    %c16_i32 = arith.constant 16 : i32
    %8 = arith.muli %arg1, %c16_i32 : i32
    %9 = tpu.assume_multiple %8, 16 : i32
    %10 = arith.index_cast %9 : i32 to index
    %c0 = arith.constant 0 : index
    %11 = vector.load %arg10[%10, %c0] : memref<16x128xf32, #tpu.memory_space<vmem>>, vector<16x128xf32>
    %c0_4 = arith.constant 0 : index
    %c0_5 = arith.constant 0 : index
    %12 = vector.load %arg11[%c0_4, %c0_5] : memref<16x128xf32, #tpu.memory_space<vmem>>, vector<16x128xf32>
    %c0_6 = arith.constant 0 : index
    %c0_7 = arith.constant 0 : index
    %13 = vector.load %arg4[%c0_6, %c0_7] : memref<16x16xbf16, #tpu.memory_space<vmem>>, vector<16x16xbf16>
    %14 = arith.extf %13 : vector<16x16xbf16> to vector<16x16xf32>
    %cst = arith.constant dense<0.000000e+00> : vector<16x128xf32>
    %15 = tpu.matmul %14, %11, %cst {dimension_numbers = #tpu.dot_dimension_numbers<[1], [0], [0], [1], [0, 0, 1, 1], [], []>} : vector<16x16xf32>, vector<16x128xf32>, vector<16x128xf32> -> vector<16x128xf32>
    %16 = arith.addf %12, %15 : vector<16x128xf32>
    %c0_8 = arith.constant 0 : index
    %c0_9 = arith.constant 0 : index
    %17 = vector.load %arg11[%c0_8, %c0_9] : memref<16x128xf32, #tpu.memory_space<vmem>>, vector<16x128xf32>
    tpu.vector_store %arg11[%c0_8, %c0_9], %16 {strides = array<i32>} : memref<16x128xf32, #tpu.memory_space<vmem>>, vector<16x128xf32>,
    %c0_i32_10 = arith.constant 0 : i32
    %18 = arith.cmpi eq, %arg1, %c0_i32_10 : i32
    %19 = arith.extui %18 : i1 to i32
    %c0_i32_11 = arith.constant 0 : i32
    %20 = arith.cmpi ne, %19, %c0_i32_11 : i32
    scf.if %20 {
      %c16_i32_12 = arith.constant 16 : i32
      %21 = arith.muli %arg0, %c16_i32_12 : i32
      %22 = tpu.assume_multiple %21, 16 : i32
      %23 = arith.index_cast %22 : i32 to index
      %c0_13 = arith.constant 0 : index
      %24 = vector.load %arg10[%23, %c0_13] : memref<16x128xf32, #tpu.memory_space<vmem>>, vector<16x128xf32>
      %c0_14 = arith.constant 0 : index
      %c0_15 = arith.constant 0 : index
      %25 = vector.load %arg11[%c0_14, %c0_15] : memref<16x128xf32, #tpu.memory_space<vmem>>, vector<16x128xf32>
      %26 = tpu.concatenate %24, %25 in 1 : vector<16x128xf32>, vector<16x128xf32> -> vector<16x256xf32>
      %c0_16 = arith.constant 0 : index
      %c0_17 = arith.constant 0 : index
      %27 = vector.load %arg7[%c0_16, %c0_17] : memref<256x128xf32, #tpu.memory_space<vmem>>, vector<256x128xf32>
      %cst_18 = arith.constant dense<0.000000e+00> : vector<16x128xf32>
      %28 = tpu.matmul %26, %27, %cst_18 {dimension_numbers = #tpu.dot_dimension_numbers<[1], [0], [0], [1], [0, 0, 1, 1], [], []>} : vector<16x256xf32>, vector<256x128xf32>, vector<16x128xf32> -> vector<16x128xf32>
      %c0_19 = arith.constant 0 : index
      %c0_20 = arith.constant 0 : index
      %29 = vector.load %arg8[%c0_19, %c0_20] : memref<1x128xf32, #tpu.memory_space<vmem>>, vector<1x128xf32>
      %30 = vector.broadcast %29 : vector<1x128xf32> to vector<16x128xf32>
      %31 = arith.addf %28, %30 : vector<16x128xf32>
      %cst_21 = arith.constant 0.000000e+00 : f32
      %32 = vector.broadcast %cst_21 : f32 to vector<16x128xf32>
      %33 = arith.maximumf %31, %32 : vector<16x128xf32>
      %c0_22 = arith.constant 0 : index
      %c0_23 = arith.constant 0 : index
      %34 = vector.load %arg9[%c0_22, %c0_23] : memref<16x128xf32, #tpu.memory_space<vmem>>, vector<16x128xf32>
      tpu.vector_store %arg9[%c0_22, %c0_23], %33 {strides = array<i32>} : memref<16x128xf32, #tpu.memory_space<vmem>>, vector<16x128xf32>,
    } else {
    }
    return
  }
  func.func @transform_0(%arg0: i32, %arg1: i32) -> (i32, i32) {
    %c0_i32 = arith.constant 0 : i32
    %c0_i32_0 = arith.constant 0 : i32
    %c0_i32_1 = arith.constant 0 : i32
    return %c0_i32, %c0_i32_0 : i32, i32
  }
  func.func @transform_1(%arg0: i32, %arg1: i32) -> (i32, i32) {
    %c0_i32 = arith.constant 0 : i32
    %c0_i32_0 = arith.constant 0 : i32
    %c0_i32_1 = arith.constant 0 : i32
    return %c0_i32, %c0_i32_0 : i32, i32
  }
  func.func @transform_2(%arg0: i32, %arg1: i32) -> (i32, i32) {
    %c0_i32 = arith.constant 0 : i32
    return %arg0, %arg1 : i32, i32
  }
  func.func @transform_3(%arg0: i32, %arg1: i32) -> (i32, i32) {
    %c0_i32 = arith.constant 0 : i32
    %c0_i32_0 = arith.constant 0 : i32
    %c0_i32_1 = arith.constant 0 : i32
    return %c0_i32, %c0_i32_0 : i32, i32
  }
  func.func @transform_4(%arg0: i32, %arg1: i32) -> (i32, i32) {
    %c0_i32 = arith.constant 0 : i32
    %c0_i32_0 = arith.constant 0 : i32
    %c0_i32_1 = arith.constant 0 : i32
    return %c0_i32, %c0_i32_0 : i32, i32
  }
  func.func @transform_5(%arg0: i32, %arg1: i32) -> (i32, i32) {
    %c0_i32 = arith.constant 0 : i32
    %c0_i32_0 = arith.constant 0 : i32
    %c0_i32_1 = arith.constant 0 : i32
    return %c0_i32, %c0_i32_0 : i32, i32
  }
  func.func @transform_6(%arg0: i32, %arg1: i32) -> (i32, i32) {
    %c0_i32 = arith.constant 0 : i32
    %c0_i32_0 = arith.constant 0 : i32
    %c0_i32_1 = arith.constant 0 : i32
    return %c0_i32, %c0_i32_0 : i32, i32
  }
  func.func @transform_7(%arg0: i32, %arg1: i32) -> (i32, i32) {
    %c0_i32 = arith.constant 0 : i32
    %c0_i32_0 = arith.constant 0 : i32
    return %arg0, %c0_i32 : i32, i32
  }
}

</mosaic_0001>

<bundles_post_ra>
// kernel: tpu_custom_call.1
= control target key start
LH: loop header
LB: loop body
LE: loop exit
PB: predicated region body
PF: predicated region fallthrough
CT: control target
= control target key end

     0   :  { %12 = vsyncpa [#allocation5], 0  ;;  %s782_s0 = inlined_call_operand.hbm [shape: f32[8,256], index: 0, kind: input, shape index: {}]   ;;  %s783_s1 = inlined_call_operand.hbm [shape: f32[8,128], index: 1, kind: input, shape index: {}]   ;;  %s784_s2 = inlined_call_operand.hbm [shape: bf16[16,16], index: 2, kind: input, shape index: {}]   ;;  %s785_s3 = inlined_call_operand.hbm [shape: f32[256,128], index: 3, kind: input, shape index: {}]   ;;  %s786_s4 = inlined_call_operand.vmem [shape: f32[1,128], index: 4, kind: input, shape index: {}]   ;;  %s787_s5 = inlined_call_operand.hbm [shape: f32[256,128], index: 5, kind: input, shape index: {}]   ;;  %s788_s6 = inlined_call_operand.vmem [shape: f32[1,128], index: 6, kind: input, shape index: {}]   ;;  %s789_s7 = inlined_call_operand.hbm [shape: f32[16,128], index: 7, kind: output, shape index: {}]  }
   0x1   :  { %13 = vsyncpa [#allocation8], 0 }
   0x2   :  { %14 = vsyncpa [#allocation11], 0 }
   0x3   :  { %15 = vsyncpa [#allocation6], 0  ;;  %s688_s24 = smov [#allocation7]   ;;  %s689_s26 = smov [#allocation10]  }
   0x4   :  { %s32_s25 = sshll.u32 %s688_s24, 4  ;;  %s53_s27 = sshll.u32 %s689_s26, 4  ;;  %s33_s25 = int_to_ptr.vmem [resolvable:$true] %s32_s25  ;;  %s54_s27 = int_to_ptr.vmem [resolvable:$true] %s53_s27 }
   0x5   :  { %s568_s28 = scalar_lea.vmem %s33_s25, 128  ;;  %p573_p1 = scmp.lt.s32.totalorder %s33_s25, %s33_s25 }
   0x6   :  { %p569_p0 = scmp.ne.s32.totalorder %s33_s25, %s568_s28  ;;  %p574_p2 = scmp.lt.s32.totalorder %s568_s28, %s568_s28 }
   0x8   :  { %p575_p3 = por %p574_p2, %p573_p1 }
   0xa   :  { %p576_p4 = pnand %p575_p3, %p569_p0 }
   0xc   :  { %579 = shalt.err (!%p576_p4)
}
   0xd   :  { %35 = dma.hbm_to_vmem [thread:$0]  %s783_s1, 128, %s33_s25, [#allocation8]  }
   0xe   :  { %s588_s8 = scalar_lea.vmem %s54_s27, 4096  ;;  %p593_p6 = scmp.lt.s32.totalorder %s54_s27, %s54_s27 }
   0xf   :  { %p589_p5 = scmp.ne.s32.totalorder %s54_s27, %s588_s8  ;;  %p594_p7 = scmp.lt.s32.totalorder %s588_s8, %s588_s8 }
  0x11   :  { %p595_p8 = por %p594_p7, %p593_p6 }
  0x13   :  { %p596_p9 = pnand %p595_p8, %p589_p5 }
  0x15   :  { %599 = shalt.err (!%p596_p9)
}
  0x16   :  { %s690_s9 = smov 128   ;;  %s691_s10 = smov 8  }
  0x17   :  { %59 = dma.hbm_to_vmem [thread:$0]  %s785_s3, 4096, %s54_s27, [#allocation11], %s690_s9, %s690_s9, %s691_s10  }
  0x18   :  { %s692_s13 = smov [#allocation4]   ;;  %s693_s15 = smov [#allocation9]  }
  0x19   :  { %s22_s14 = sshll.u32 %s692_s13, 4  ;;  %s41_s1 = sshll.u32 %s693_s15, 4  ;;  %s23_s14 = int_to_ptr.vmem [resolvable:$true] %s22_s14  ;;  %s42_s1 = int_to_ptr.vmem [resolvable:$true] %s41_s1 }
  0x1a   :  { %s608_s16 = scalar_lea.vmem %s23_s14, 256  ;;  %p613_p11 = scmp.lt.s32.totalorder %s23_s14, %s23_s14 }
  0x1b   :  { %p609_p10 = scmp.ne.s32.totalorder %s23_s14, %s608_s16  ;;  %p614_p12 = scmp.lt.s32.totalorder %s608_s16, %s608_s16 }
  0x1d   :  { %p615_p13 = por %p614_p12, %p613_p11 }
  0x1f   :  { %p616_p0 = pnand %p615_p13, %p609_p10 }
  0x21   :  { %619 = shalt.err (!%p616_p0)
}
  0x22   :  { %25 = dma.hbm_to_vmem [thread:$0]  %s782_s0, 256, %s23_s14, [#allocation5]  }
  0x23   :  { %s628_s19 = scalar_lea.vmem %s42_s1, 128  ;;  %p633_p2 = scmp.lt.s32.totalorder %s42_s1, %s42_s1 }
  0x24   :  { %p629_p1 = scmp.ne.s32.totalorder %s42_s1, %s628_s19  ;;  %p634_p3 = scmp.lt.s32.totalorder %s628_s19, %s628_s19 }
  0x26   :  { %p635_p4 = por %p634_p3, %p633_p2 }
  0x28   :  { %p636_p5 = pnand %p635_p4, %p629_p1 }
  0x2a   :  { %639 = shalt.err (!%p636_p5)
}
  0x2b   :  { %s694_s3 = smov 64   ;;  %s695_s20 = smov 4  }
  0x2c   :  { %47 = dma.hbm_to_vmem [thread:$0]  %s784_s2, 128, %s42_s1, [#allocation8], %s694_s3, %s694_s3, %s695_s20  }
  0x2d   :  { %s696_s23 = smov [#allocation12]  }
  0x2e   :  { %s67_s24 = sshll.u32 %s696_s23, 4  ;;  %s68_s24 = int_to_ptr.vmem [resolvable:$true] %s67_s24 }
  0x2f   :  { %s648_s25 = scalar_lea.vmem %s68_s24, 4096  ;;  %p653_p7 = scmp.lt.s32.totalorder %s68_s24, %s68_s24 }
  0x30   :  { %p649_p6 = scmp.ne.s32.totalorder %s68_s24, %s648_s25  ;;  %p654_p8 = scmp.lt.s32.totalorder %s648_s25, %s648_s25 }
  0x32   :  { %p655_p9 = por %p654_p8, %p653_p7 }
  0x34   :  { %p656_p10 = pnand %p655_p9, %p649_p6 }
  0x36   :  { %659 = shalt.err (!%p656_p10)
}
  0x37   :  { %73 = dma.hbm_to_vmem [thread:$0]  %s787_s5, 4096, %s68_s24, [#allocation11], %s690_s9, %s690_s9, %s691_s10  }
  0x38   :  { %680 = dma.done.wait [#allocation5], 256  }
  0x39   :  { %681 = vsyncadd [#allocation5], 4294967040 }
  0x3a   :  { %682 = dma.done.wait [#allocation8], 256  }
  0x3b   :  { %683 = vsyncadd [#allocation8], 4294967040 }
  0x3c   :  { %684 = dma.done.wait [#allocation11], 8192  }
  0x3d   :  { %685 = vsyncadd [#allocation11], 4294959104  ;;  %v130_v0 = vld [vmem:[#allocation10 + $0xf8] sm:$0xff]  ;;  %v129_v2 = vld [vmem:[#allocation10 + $0xf0] sm:$0xff]  ;;  %vm226_vm0 = vcmask 130048   ;;  %s697_s28 = smov [#allocation13]  }
  0x3e   :  { %v114_v1 = vld [vmem:[#allocation10 + $0x78] sm:$0xff]  ;;  %466 = vmatprep.subr.mxu0 %v130_v0  ;;  %v113_v3 = vld [vmem:[#allocation10 + $0x70] sm:$0xff]  ;;  %v128_v4 = vld [vmem:[#allocation10 + $0xe8] sm:$0xff]  ;;  %s444_s29 = sshll.u32 %s697_s28, 4  ;;  %s445_s29 = int_to_ptr.vmem [resolvable:$true] %s444_s29 }
  0x3f   :  { %467 = vmatpush3.msra.mxu0 %v114_v1  ;;  %v112_v5 = vld [vmem:[#allocation10 + $0x68] sm:$0xff]  ;;  %v127_v6 = vld [vmem:[#allocation10 + $0xe0] sm:$0xff]  ;;  %v126_v8 = vld [vmem:[#allocation10 + $0xd8] sm:$0xff]  ;;  %s660_s30 = scalar_lea.vmem %s445_s29, 256  ;;  %p665_p12 = scmp.lt.s32.totalorder %s445_s29, %s445_s29 }
  0x40   :  { %468 = vmatprep.subr.mxu0 %v129_v2  ;;  %v111_v7 = vld [vmem:[#allocation10 + $0x60] sm:$0xff]  ;;  %v110_v9 = vld [vmem:[#allocation10 + $0x58] sm:$0xff]  ;;  %v125_v10 = vld [vmem:[#allocation10 + $0xd0] sm:$0xff]  ;;  %p661_p11 = scmp.ne.s32.totalorder %s445_s29, %s660_s30  ;;  %p666_p13 = scmp.lt.s32.totalorder %s660_s30, %s660_s30 }
  0x41   :  { %469 = vmatpush3.msra.mxu0 %v113_v3  ;;  %v109_v11 = vld [vmem:[#allocation10 + $0x50] sm:$0xff]  ;;  %v124_v12 = vld [vmem:[#allocation10 + $0xc8] sm:$0xff]  ;;  %v123_v15 = vld [vmem:[#allocation10 + $0xc0] sm:$0xff] }
  0x42   :  { %470 = vmatprep.subr.mxu0 %v128_v4  ;;  %v98_v13 = vld [vmem:[#allocation4 + $0x8] sm:$0xff]  ;;  %v107_v16 = vld [vmem:[#allocation10 + $0x40] sm:$0xff]  ;;  %v122_v17 = vld [vmem:[#allocation10 + $0xb8] sm:$0xff]  ;;  %p667_p0 = por %p666_p13, %p665_p12 }
  0x43   :  { %471 = vmatpush3.msra.mxu0 %v112_v5  ;;  %v108_v14 = vld [vmem:[#allocation10 + $0x48] sm:$0xff]  ;;  %202 = vmatprep.mubr.f32.mxu0 %v98_v13  ;;  %v106_v18 = vld [vmem:[#allocation10 + $0x38] sm:$0xff]  ;;  %v121_v19 = vld [vmem:[#allocation10 + $0xb0] sm:$0xff] }
  0x44   :  { %472 = vmatprep.subr.mxu0 %v127_v6  ;;  %v105_v20 = vld [vmem:[#allocation10 + $0x30] sm:$0xff]  ;;  %v120_v21 = vld [vmem:[#allocation10 + $0xa8] sm:$0xff]  ;;  %v119_v23 = vld [vmem:[#allocation10 + $0xa0] sm:$0xff]  ;;  %p668_p1 = pnand %p667_p0, %p661_p11 }
  0x45   :  { %473 = vmatpush3.msra.mxu0 %v111_v7  ;;  %v104_v22 = vld [vmem:[#allocation10 + $0x28] sm:$0xff]  ;;  %v103_v24 = vld [vmem:[#allocation10 + $0x20] sm:$0xff]  ;;  %v118_v25 = vld [vmem:[#allocation10 + $0x98] sm:$0xff] }
  0x46   :  { %474 = vmatprep.subr.mxu0 %v126_v8  ;;  %v102_v26 = vld [vmem:[#allocation10 + $0x18] sm:$0xff]  ;;  %v117_v27 = vld [vmem:[#allocation10 + $0x90] sm:$0xff]  ;;  %v116_v29 = vld [vmem:[#allocation10 + $0x88] sm:$0xff] }
  0x47   :  { %475 = vmatpush3.msra.mxu0 %v110_v9  ;;  %v101_v28 = vld [vmem:[#allocation10 + $0x10] sm:$0xff]  ;;  %v100_v30 = vld [vmem:[#allocation10 + $0x8] sm:$0xff]  ;;  %v115_v31 = vld [vmem:[#allocation10 + $0x80] sm:$0xff] }
  0x48   :  { %476 = vmatprep.subr.mxu0 %v125_v10  ;;  %v99_v32 = vld [vmem:[#allocation10] sm:$0xff]  ;;  %v759_v34 = vld [vmem:[#allocation7] sm:$0xff]  ;;  %v762_v35 = vld [vmem:[#allocation9] sm:$0xff]  }
  0x49   :  { %477 = vmatpush3.msra.mxu0 %v109_v11  ;;  %v97_v33 = vld [vmem:[#allocation4] sm:$0xff]  ;;  %v464_v36 = vunpack.c.l.bf16 %v762_v35  ;;  %v352_v37 = vld [vmem:[#allocation12 + $0xf8] sm:$0xff]  ;;  %v351_v39 = vld [vmem:[#allocation12 + $0xf0] sm:$0xff]  ;;  %v465_v6 = vunpack.c.h.bf16 %v762_v35 }
  0x4a   :  { %478 = vmatprep.subr.mxu0 %v124_v12  ;;  %v336_v38 = vld [vmem:[#allocation12 + $0x78] sm:$0xff]  ;;  %505 = vmatprep.subr.mxu1 %v352_v37  ;;  %v335_v40 = vld [vmem:[#allocation12 + $0x70] sm:$0xff]  ;;  %v350_v41 = vld [vmem:[#allocation12 + $0xe8] sm:$0xff] }
  0x4b   :  { %479 = vmatpush3.msra.mxu0 %v108_v14  ;;  %506 = vmatpush3.msra.mxu1 %v336_v38  ;;  %v334_v42 = vld [vmem:[#allocation12 + $0x68] sm:$0xff]  ;;  %v349_v43 = vld [vmem:[#allocation12 + $0xe0] sm:$0xff]  ;;  %v348_v45 = vld [vmem:[#allocation12 + $0xd8] sm:$0xff] }
  0x4c   :  { %480 = vmatprep.subr.mxu0 %v123_v15  ;;  %507 = vmatprep.subr.mxu1 %v351_v39  ;;  %v333_v44 = vld [vmem:[#allocation12 + $0x60] sm:$0xff]  ;;  %v332_v46 = vld [vmem:[#allocation12 + $0x58] sm:$0xff]  ;;  %v347_v47 = vld [vmem:[#allocation12 + $0xd0] sm:$0xff] }
  0x4d   :  { %481 = vmatpush3.msra.mxu0 %v107_v16  ;;  %508 = vmatpush3.msra.mxu1 %v335_v40  ;;  %v331_v48 = vld [vmem:[#allocation12 + $0x50] sm:$0xff]  ;;  %v346_v49 = vld [vmem:[#allocation12 + $0xc8] sm:$0xff]  ;;  %v345_v51 = vld [vmem:[#allocation12 + $0xc0] sm:$0xff] }
  0x4e   :  { %482 = vmatprep.subr.mxu0 %v122_v17  ;;  %509 = vmatprep.subr.mxu1 %v350_v41  ;;  %v330_v50 = vld [vmem:[#allocation12 + $0x48] sm:$0xff]  ;;  %v329_v52 = vld [vmem:[#allocation12 + $0x40] sm:$0xff]  ;;  %v344_v53 = vld [vmem:[#allocation12 + $0xb8] sm:$0xff] }
  0x4f   :  { %483 = vmatpush3.msra.mxu0 %v106_v18  ;;  %510 = vmatpush3.msra.mxu1 %v334_v42  ;;  %v328_v54 = vld [vmem:[#allocation12 + $0x38] sm:$0xff]  ;;  %v343_v55 = vld [vmem:[#allocation12 + $0xb0] sm:$0xff]  ;;  %v342_v57 = vld [vmem:[#allocation12 + $0xa8] sm:$0xff] }
  0x50   :  { %484 = vmatprep.subr.mxu0 %v121_v19  ;;  %511 = vmatprep.subr.mxu1 %v349_v43  ;;  %v327_v56 = vld [vmem:[#allocation12 + $0x30] sm:$0xff]  ;;  %v326_v58 = vld [vmem:[#allocation12 + $0x28] sm:$0xff]  ;;  %v341_v59 = vld [vmem:[#allocation12 + $0xa0] sm:$0xff] }
  0x51   :  { %485 = vmatpush3.msra.mxu0 %v105_v20  ;;  %512 = vmatpush3.msra.mxu1 %v333_v44  ;;  %v325_v60 = vld [vmem:[#allocation12 + $0x20] sm:$0xff]  ;;  %v340_v61 = vld [vmem:[#allocation12 + $0x98] sm:$0xff]  ;;  %v339_v63 = vld [vmem:[#allocation12 + $0x90] sm:$0xff] }
  0x52   :  { %486 = vmatprep.subr.mxu0 %v120_v21  ;;  %513 = vmatprep.subr.mxu1 %v348_v45  ;;  %v324_v62 = vld [vmem:[#allocation12 + $0x18] sm:$0xff]  ;;  %v323_v0 = vld [vmem:[#allocation12 + $0x10] sm:$0xff]  ;;  %v458_v2 = vld [vmem:[%s786_s4] ss:$0 sm:$0xff] }
  0x53   :  { %487 = vmatpush3.msra.mxu0 %v104_v22  ;;  %514 = vmatpush3.msra.mxu1 %v332_v46  ;;  %v338_v7 = vld [vmem:[#allocation12 + $0x88] sm:$0xff]  ;;  %v337_v9 = vld [vmem:[#allocation12 + $0x80] sm:$0xff] }
  0x54   :  { %488 = vmatprep.subr.mxu0 %v119_v23  ;;  %515 = vmatprep.subr.mxu1 %v347_v47  ;;  %v322_v8 = vld [vmem:[#allocation12 + $0x8] sm:$0xff]  ;;  %v321_v10 = vld [vmem:[#allocation12] sm:$0xff] }
  0x55   :  { %489 = vmatpush3.msra.mxu0 %v103_v24  ;;  %516 = vmatpush3.msra.mxu1 %v331_v48  ;;  %v461_v14 = vld [vmem:[%s788_s6] ss:$0 sm:$0xff] }
  0x56   :  { %490 = vmatprep.subr.mxu0 %v118_v25  ;;  %517 = vmatprep.subr.mxu1 %v346_v49 }
  0x57   :  { %491 = vmatpush3.msra.mxu0 %v102_v26  ;;  %518 = vmatpush3.msra.mxu1 %v330_v50 }
  0x58   :  { %492 = vmatprep.subr.mxu0 %v117_v27  ;;  %519 = vmatprep.subr.mxu1 %v345_v51 }
  0x59   :  { %493 = vmatpush3.msra.mxu0 %v101_v28  ;;  %520 = vmatpush3.msra.mxu1 %v329_v52 }
  0x5a   :  { %494 = vmatprep.subr.mxu0 %v116_v29  ;;  %521 = vmatprep.subr.mxu1 %v344_v53 }
  0x5b   :  { %495 = vmatpush3.msra.mxu0 %v100_v30  ;;  %522 = vmatpush3.msra.mxu1 %v328_v54 }
  0x5c   :  { %496 = vmatprep.subr.mxu0 %v115_v31  ;;  %523 = vmatprep.subr.mxu1 %v343_v55 }
  0x5d   :  { %497 = vmatpush3.msra.mxu0 %v99_v32  ;;  %524 = vmatpush3.msra.mxu1 %v327_v56 }
  0x5e   :  { %203 = vmatmul.mubr.f32.vlgmr.msra.gmra.mxu0 %v97_v33  ;;  %543 = vmatprep.subr.mxu0 %v759_v34 }
  0x5f   :  { %544 = vmatpush3.msra.mxu0 %v759_v34  ;;  %547 = vmatprep.mubr.msk.f32.mxu0 %vm226_vm0, %v464_v36 }
  0x60   :  { %525 = vmatprep.subr.mxu1 %v342_v57 }
  0x61   :  { %526 = vmatpush3.msra.mxu1 %v326_v58 }
  0x62   :  { %527 = vmatprep.subr.mxu1 %v341_v59 }
  0x63   :  { %528 = vmatpush3.msra.mxu1 %v325_v60 }
  0x64   :  { %529 = vmatprep.subr.mxu1 %v340_v61 }
  0x65   :  { %530 = vmatpush3.msra.mxu1 %v324_v62 }
  0x66   :  { %531 = vmatprep.subr.mxu1 %v339_v63 }
  0x67   :  { %532 = vmatpush3.msra.mxu1 %v323_v0 }
  0x68   :  { %533 = vmatprep.subr.mxu1 %v338_v7 }
  0x69   :  { %534 = vmatpush3.msra.mxu1 %v322_v8 }
  0x6a   :  { %535 = vmatprep.subr.mxu1 %v337_v9 }
  0x6b   :  { %536 = vmatpush3.msra.mxu1 %v321_v10 }
 0x11e   :  { %v498_v1 = vpop.f32.mrf.mxu0 }
 0x120   :  { %v499_v3 = vpop.f32.mrf.mxu0 }
 0x121   :  { %v500_v4 = vadd.f32 %v499_v3, %v498_v1 }
 0x123   :  { %v205_v5 = vadd.f32 %v500_v4, %v458_v2 }
 0x125   :  { %545 = vmatprep.subr.mxu0 %v205_v5 }
 0x126   :  { %546 = vmatpush3.msra.mxu0 %v205_v5 }
 0x127   :  { %548 = vmatmul.mubr.msk.f32.vlgmr.msra.gmra.mxu0 %vm226_vm0, %v465_v6 }
 0x1e7   :  { %v549_v11 = vpop.f32.mrf.mxu0 }
 0x1e9   :  { %v299_v12 = vpop.f32.mrf.mxu0 }
 0x1ea   :  { %424 = vmatprep.mubr.f32.mxu1 %v299_v12 }
 0x1eb   :  { %425 = vmatmul.mubr.f32.vlgmr.msra.gmra.mxu1 %v205_v5 }
 0x1ec   :  { %429 = vmatprep.mubr.f32.mxu1 %v549_v11 }
 0x1ef   :  { %430 = vmatmul.mubr.f32.gmra.mxu1 %v759_v34 }
 0x2ab   :  { %v537_v13 = vpop.f32.mrf.mxu1 }
 0x2ad   :  { %v538_v15 = vpop.f32.mrf.mxu1 }
 0x2ae   :  { %v539_v16 = vadd.f32 %v538_v15, %v537_v13 }
 0x2af   :  { %v540_v17 = vpop.f32.mrf.mxu1 }
 0x2b0   :  { %v427_v18 = vadd.f32 %v539_v16, %v461_v14 }
 0x2b1   :  { %v541_v19 = vpop.f32.mrf.mxu1 }
 0x2b2   :  { %v435_v20 = vmax.f32 %v427_v18, 0.0  ;;  %v542_v21 = vadd.f32 %v541_v19, %v540_v17 }
 0x2b4   :  { %437 = vst [vmem:[#allocation13] sm:$0xff] %v435_v20  ;;  %v432_v22 = vadd.f32 %v542_v21, %v461_v14 }
 0x2b6   :  { %v436_v23 = vmax.f32 %v432_v22, 0.0 }
 0x2b8   :  { %438 = vst [vmem:[#allocation13 + $0x8] sm:$0xff] %v436_v23 }
 0x2b9   :  { %671 = shalt.err (!%p668_p1)
}
 0x2ba   :  { %450 = dma.vmem_to_hbm [thread:$0]  %s445_s29, 256, %s789_s7, [#allocation6], %s690_s9, %s690_s9, %s691_s10  }
 0x2bb   :  { %686 = dma.done.wait [#allocation6], 256  }
 0x2bc   :  { %687 = vsyncadd [#allocation6], 4294967040 }
 0x2bd   :  { %454 = vsyncpa [#allocation5], 1 }
 0x2be   :  { %455 = vsyncpa [#allocation8], 1 }
 0x2bf   :  { %456 = vsyncpa [#allocation11], 1 }
 0x2c0   :  { %457 = vsyncpa [#allocation6], 1 }

</bundles_post_ra>
